<compile_context>
chip_gen: v6e
topology: v6e:2x2x1
jax: 0.10.0
libtpu: 0.0.40
codegen_flags: <defaults>
</compile_context>

<pallas_src>
import functools

import jax
import jax.numpy as jnp
import numpy as np
from jax import lax
from jax.experimental import pallas as pl
from jax.experimental.pallas import tpu as pltpu


def _cross_encoder_kernel(offs_ref,      # scalar-prefetch: CLS offsets (SMEM), [P]
                          hs_ref,        # hidden_states, raw HBM ref [total, H]
                          wp_hbm,        # pooler dense weight, raw HBM ref [H, H]
                          bp_ref,        # pooler dense bias   (1, H)   VMEM, f32
                          wc_ref,        # classifier weight   (NL, H)  VMEM (transposed)
                          bc_ref,        # classifier bias     (1, NL)  VMEM, f32
                          out_ref,       # scores              (P, NL)
                          wp_buf,        # VMEM scratch (2, tk, H), weight dtype
                          cls_acc,       # VMEM scratch (P_pad, H), hidden dtype
                          row_sems,      # DMA semaphore  (1,) — CLS row funnel
                          wp_sems,       # DMA semaphores (2,) — weight double buffer
                          *, num_prompts, num_labels, hidden, k_chunk):
    P_pad = cls_acc.shape[0]

    # Static K-chunk schedule (handles a remainder chunk).
    chunks = []
    k0 = 0
    while k0 < hidden:
        sz = min(k_chunk, hidden - k0)
        chunks.append((k0, sz))
        k0 += sz
    n_chunks = len(chunks)

    def wp_copy(ci, slot):
        ck0, csz = chunks[ci]
        return pltpu.make_async_copy(
            wp_hbm.at[pl.ds(ck0, csz), :],
            wp_buf.at[slot, pl.ds(0, csz), :],
            wp_sems.at[slot])

    # Kick off the first weight chunk immediately so it overlaps the CLS gather.
    wp_copy(0, 0).start()

    # Gather the CLS (first) token of every prompt.  All row DMAs funnel onto a
    # single semaphore; issue everything, then wait once per row.  (A zero-length
    # prompt in the middle reads the next prompt's first token — same assumption
    # as the torch code; a zero-length LAST prompt is clamped in the wrapper.)
    row_sem = row_sems.at[0]

    def row_copy(i):
        return pltpu.make_async_copy(
            hs_ref.at[pl.ds(offs_ref[i], 1), :],
            cls_acc.at[pl.ds(i, 1), :],
            row_sem)

    if num_prompts <= 32:
        # Small P: fully unrolled issue/wait.
        for i in range(num_prompts):
            row_copy(i).start()
        for i in range(num_prompts):
            row_copy(i).wait()
    else:
        # Large P: bounded loops, no instruction-memory bloat.
        def _start(i, c):
            row_copy(i).start()
            return c

        def _wait(i, c):
            # Wait amount only depends on the (1, H) dst shape; src index is
            # irrelevant, so use a static descriptor.
            pltpu.make_async_copy(hs_ref.at[pl.ds(0, 1), :],
                                  cls_acc.at[pl.ds(0, 1), :],
                                  row_sem).wait()
            return c

        lax.fori_loop(0, num_prompts, _start, 0)
        lax.fori_loop(0, num_prompts, _wait, 0)

    # Zero padded rows so no garbage flows through tanh/sigmoid (results for the
    # real rows are independent either way; this just keeps debug NaN screens quiet).
    if P_pad > num_prompts:
        cls_acc[pl.ds(num_prompts, P_pad - num_prompts), :] = jnp.zeros(
            (P_pad - num_prompts, hidden), cls_acc.dtype)

    # Pooler: dense(H, H) via K-chunked, double-buffered weight streaming.
    # acc holds the f32 partial sums of x @ wp.
    acc = jnp.zeros((P_pad, hidden), jnp.float32)
    for ci, (ck0, csz) in enumerate(chunks):
        slot = ci & 1
        # Wait for the current chunk, then immediately start the next one into
        # the other slot so the DMA overlaps this chunk's MXU pass.
        wp_copy(ci, slot).wait()
        if ci + 1 < n_chunks:
            wp_copy(ci + 1, 1 - slot).start()

        x_c = cls_acc[:, pl.ds(ck0, csz)]
        w_c = wp_buf[slot, pl.ds(0, csz), :]
        if x_c.dtype != w_c.dtype:
            x_c = x_c.astype(w_c.dtype)   # e.g. feed bf16 into the MXU
        acc = acc + jnp.dot(x_c, w_c, preferred_element_type=jnp.float32)

    pooled = jnp.tanh(acc + bp_ref[...])          # bp is already f32

    # Classifier: Linear(H, num_labels).
    if num_labels == 1:
        # A (P,H)x(H,1) matmul lights up a single MXU column; use a VPU
        # broadcast multiply + lane reduce against the (1, H) weight row.
        wc_row = wc_ref[...].astype(jnp.float32)                   # (1, H)
        logits = jnp.sum(pooled * wc_row, axis=-1, keepdims=True)  # (P_pad, 1)
    else:
        logits = lax.dot_general(
            pooled, wc_ref[...].astype(jnp.float32),
            dimension_numbers=(((1,), (1,)), ((), ())),
            preferred_element_type=jnp.float32)
    logits = logits + bc_ref[...]

    # default_activation_function: sigmoid for num_labels == 1, identity otherwise.
    scores = jax.nn.sigmoid(logits) if num_labels == 1 else logits
    out_ref[...] = scores[:num_prompts, :].astype(out_ref.dtype)


def cross_encoding_pooler(hidden_states, prompt_lens, wp, bp, wc, bc,
                          *, weight_dtype=jnp.bfloat16, k_chunk=512):
    """Returns scores of shape [num_prompts] (squeeze(-1) as in the torch module).

    hidden_states: [total_tokens, H]  (flat concat of all prompts' tokens)
    prompt_lens:   [P] int32
    wp, bp:        pooler dense params, shapes (H, H), (1, H)   (y = x @ wp + bp)
    wc, bc:        classifier params,  shapes (H, NL), (1, NL)  (y = x @ wc + bc)
    weight_dtype:  dtype for wp/wc streamed through the MXU.  Defaults to
                   bfloat16 (halves the dominant weight HBM traffic).  NOTE:
                   activations are also cast to this dtype at the dot, so the
                   precision loss slightly exceeds pure weight quantization.
                   Pass None to keep the original weight dtype.
    k_chunk:       K-tile (rows of wp) streamed per DMA; multiple of 128 ideal.
    """
    total, H = hidden_states.shape
    P = int(prompt_lens.shape[0])
    NL = int(wc.shape[1])

    # dtype-aware sublane padding for the CLS scratch (8/f32, 16/bf16, 32/int8).
    h_itemsize = jnp.dtype(hidden_states.dtype).itemsize
    row_tile = max(8, 32 // max(1, h_itemsize))
    P_pad = max(row_tile, ((P + row_tile - 1) // row_tile) * row_tile)

    # CLS-token (prompt start) offsets — plain-JAX glue.  Clamp so a
    # zero-length LAST prompt cannot DMA one row past the end of hidden_states.
    offsets = jnp.concatenate(
        [jnp.zeros((1,), jnp.int32),
         jnp.cumsum(prompt_lens.astype(jnp.int32))[:-1]])
    offsets = jnp.minimum(offsets, jnp.int32(total - 1))

    # Classifier weight as (NL, H) rows; biases stay f32 (VPU/EUP math in f32).
    wc_t = wc.T
    if weight_dtype is not None:
        wp = wp.astype(weight_dtype)
        wc_t = wc_t.astype(weight_dtype)
    bp = bp.astype(jnp.float32)
    bc = bc.astype(jnp.float32)

    # Weight K-chunk: single chunk for small H, otherwise ~512 rows (lane/sublane
    # aligned slices as long as H is a multiple of 128, the usual case).
    tk = H if H <= k_chunk else int(k_chunk)

    kernel = functools.partial(_cross_encoder_kernel,
                               num_prompts=P, num_labels=NL,
                               hidden=H, k_chunk=tk)

    # VMEM budget: 2 weight-chunk buffers + CLS scratch + f32 accumulator
    # temporaries + small operands, plus headroom; ceiling 48 MiB so we never
    # ask for the full physical VMEM on v7x.
    w_itemsize = jnp.dtype(wp.dtype).itemsize
    est = (2 * tk * H * w_itemsize            # wp double buffer
           + P_pad * H * h_itemsize           # cls_acc
           + 3 * P_pad * H * 4                # f32 acc / pooled temporaries
           + (NL * H + H + NL + P * NL) * 4)  # small operands + output
    vmem_limit = int(min(max(est + (4 << 20), 16 << 20), 48 << 20))

    out = pl.pallas_call(
        kernel,
        out_shape=jax.ShapeDtypeStruct((P, NL), jnp.float32),
        grid_spec=pltpu.PrefetchScalarGridSpec(
            num_scalar_prefetch=1,
            grid=(1,),
            in_specs=[
                pl.BlockSpec(memory_space=pl.ANY),             # hidden_states (HBM)
                pl.BlockSpec(memory_space=pl.ANY),             # wp (HBM, manual DMA)
                pl.BlockSpec((1, H), lambda i, offs: (0, 0)),   # bp
                pl.BlockSpec((NL, H), lambda i, offs: (0, 0)),  # wc (transposed rows)
                pl.BlockSpec((1, NL), lambda i, offs: (0, 0)),  # bc
            ],
            out_specs=pl.BlockSpec((P, NL), lambda i, offs: (0, 0)),
            scratch_shapes=[
                pltpu.VMEM((2, tk, H), wp.dtype),               # wp double buffer
                pltpu.VMEM((P_pad, H), hidden_states.dtype),    # cls_acc
                pltpu.SemaphoreType.DMA((1,)),                  # CLS row funnel
                pltpu.SemaphoreType.DMA((2,)),                  # weight chunk slots
            ]),
        compiler_params=pltpu.CompilerParams(
            dimension_semantics=("arbitrary",),
            vmem_limit_bytes=vmem_limit),
    )(offsets, hidden_states, wp, bp, wc_t, bc)

    return out.squeeze(-1)


def _reference(hidden_states, prompt_lens, wp, bp, wc, bc):
    offs = np.concatenate([[0], np.cumsum(np.asarray(prompt_lens))[:-1]])
    cls = np.asarray(hidden_states)[offs]                 # [P, H]
    pooled = np.tanh(cls @ np.asarray(wp) + np.asarray(bp))
    logits = pooled @ np.asarray(wc) + np.asarray(bc)
    return (1.0 / (1.0 + np.exp(-logits))).squeeze(-1)


if __name__ == "__main__":
    H = 32           # hidden size
    NL = 1           # num_labels
    prompt_lens_np = np.array([5, 3, 7, 4], dtype=np.int32)   # 4 prompts
    total_tokens = int(prompt_lens_np.sum())                  # 19

    key = jax.random.PRNGKey(0)
    k_h, k_wp, k_bp, k_wc, k_bc = jax.random.split(key, 5)

    hidden_states = jax.random.normal(k_h, (total_tokens, H), dtype=jnp.float32)
    # Deterministic synthetic parameters (pooler dense + classifier linear).
    wp = jax.random.normal(k_wp, (H, H), dtype=jnp.float32) * 0.1
    bp = jax.random.normal(k_bp, (1, H), dtype=jnp.float32) * 0.1
    wc = jax.random.normal(k_wc, (H, NL), dtype=jnp.float32) * 0.1
    bc = jax.random.normal(k_bc, (1, NL), dtype=jnp.float32) * 0.1

    prompt_lens = jnp.asarray(prompt_lens_np)
    ref = _reference(hidden_states, prompt_lens_np, wp, bp, wc, bc)

    # f32 weights (exact path).
    scores_f32 = cross_encoding_pooler(hidden_states, prompt_lens, wp, bp, wc, bc,
                                       weight_dtype=None)
    jax.block_until_ready(scores_f32)
    np.testing.assert_allclose(np.asarray(scores_f32), ref, rtol=1e-3, atol=1e-3)

    # Default path: bf16 weights (halved weight HBM traffic; f32 accumulation).
    scores_bf16 = cross_encoding_pooler(hidden_states, prompt_lens, wp, bp, wc, bc)
    jax.block_until_ready(scores_bf16)
    np.testing.assert_allclose(np.asarray(scores_bf16), ref, rtol=2e-2, atol=2e-2)

    print("KERNEL_OK")
</pallas_src>

<mosaic_0001>
module attributes {stable_mosaic.version = 11 : i64} {
  func.func @_cross_encoder_kernel(%arg0: i32, %arg1: memref<4xi32, #tpu.memory_space<smem>>, %arg2: memref<19x32xf32, #tpu.memory_space<any>>, %arg3: memref<32x32xf32, #tpu.memory_space<any>>, %arg4: memref<1x32xf32, #tpu.memory_space<vmem>>, %arg5: memref<1x32xf32, #tpu.memory_space<vmem>>, %arg6: memref<1x1xf32, #tpu.memory_space<vmem>>, %arg7: memref<4x1xf32, #tpu.memory_space<vmem>>, %arg8: memref<2x32x32xf32, #tpu.memory_space<vmem>>, %arg9: memref<8x32xf32, #tpu.memory_space<vmem>>, %arg10: memref<1x!tpu.dma_semaphore, #tpu.memory_space<semaphore_mem>>, %arg11: memref<2x!tpu.dma_semaphore, #tpu.memory_space<semaphore_mem>>) attributes {dimension_semantics = [#tpu.dimension_semantics<arbitrary>], iteration_bounds = array<i64: 1>, scalar_prefetch = 1 : i64, scratch_operands = 4 : i64, tpu.core_type = #tpu.core_type<tc>, window_params = [{}, {}, {pipeline_mode = #tpu.pipeline_mode<synchronous>, transform_indices = @transform_2, window_bounds = array<i64: 1, 32>}, {pipeline_mode = #tpu.pipeline_mode<synchronous>, transform_indices = @transform_3, window_bounds = array<i64: 1, 32>}, {pipeline_mode = #tpu.pipeline_mode<synchronous>, transform_indices = @transform_4, window_bounds = array<i64: 1, 1>}, {pipeline_mode = #tpu.pipeline_mode<synchronous>, transform_indices = @transform_5, window_bounds = array<i64: 4, 1>}]} {
    %c0_i32 = arith.constant 0 : i32
    %c0_i32_0 = arith.constant 0 : i32
    %c0_i32_1 = arith.constant 0 : i32
    %c0_i32_2 = arith.constant 0 : i32
    %0 = tpu.memref_slice %arg3[%c0_i32_1, %c0_i32_2] : memref<32x32xf32, #tpu.memory_space<any>> -> memref<32x32xf32, #tpu.memory_space<any>>
    %c0_i32_3 = arith.constant 0 : i32
    %c0_i32_4 = arith.constant 0 : i32
    %1 = tpu.memref_slice %arg8[%c0_i32, %c0_i32_3, %c0_i32_4] : memref<2x32x32xf32, #tpu.memory_space<vmem>> -> memref<1x32x32xf32, #tpu.memory_space<vmem>>
    %2 = tpu.memref_squeeze %1 : memref<1x32x32xf32, #tpu.memory_space<vmem>> -> memref<32x32xf32, #tpu.memory_space<vmem>>
    %3 = tpu.memref_slice %arg11[%c0_i32_0] : memref<2x!tpu.dma_semaphore, #tpu.memory_space<semaphore_mem>> -> memref<1x!tpu.dma_semaphore, #tpu.memory_space<semaphore_mem>>
    %4 = tpu.memref_squeeze %3 : memref<1x!tpu.dma_semaphore, #tpu.memory_space<semaphore_mem>> -> memref<!tpu.dma_semaphore, #tpu.memory_space<semaphore_mem>>
    tpu.enqueue_dma source(%0 : memref<32x32xf32, #tpu.memory_space<any>>) target(%2 : memref<32x32xf32, #tpu.memory_space<vmem>>) target_semaphore(%4 : memref<!tpu.dma_semaphore, #tpu.memory_space<semaphore_mem>>)
    %c0 = arith.constant 0 : index
    %5 = memref.load %arg1[%c0] : memref<4xi32, #tpu.memory_space<smem>>
    %c0_i32_5 = arith.constant 0 : i32
    %c0_i32_6 = arith.constant 0 : i32
    %6 = tpu.memref_slice %arg2[%5, %c0_i32_6] : memref<19x32xf32, #tpu.memory_space<any>> -> memref<1x32xf32, #tpu.memory_space<any>>
    %c0_i32_7 = arith.constant 0 : i32
    %c0_i32_8 = arith.constant 0 : i32
    %7 = tpu.memref_slice %arg9[%c0_i32_7, %c0_i32_8] : memref<8x32xf32, #tpu.memory_space<vmem>> -> memref<1x32xf32, #tpu.memory_space<vmem>>
    %8 = tpu.memref_slice %arg10[%c0_i32_5] : memref<1x!tpu.dma_semaphore, #tpu.memory_space<semaphore_mem>> -> memref<1x!tpu.dma_semaphore, #tpu.memory_space<semaphore_mem>>
    %9 = tpu.memref_squeeze %8 : memref<1x!tpu.dma_semaphore, #tpu.memory_space<semaphore_mem>> -> memref<!tpu.dma_semaphore, #tpu.memory_space<semaphore_mem>>
    tpu.enqueue_dma source(%6 : memref<1x32xf32, #tpu.memory_space<any>>) target(%7 : memref<1x32xf32, #tpu.memory_space<vmem>>) target_semaphore(%9 : memref<!tpu.dma_semaphore, #tpu.memory_space<semaphore_mem>>)
    %c1 = arith.constant 1 : index
    %10 = memref.load %arg1[%c1] : memref<4xi32, #tpu.memory_space<smem>>
    %c0_i32_9 = arith.constant 0 : i32
    %c0_i32_10 = arith.constant 0 : i32
    %11 = tpu.memref_slice %arg2[%10, %c0_i32_10] : memref<19x32xf32, #tpu.memory_space<any>> -> memref<1x32xf32, #tpu.memory_space<any>>
    %c1_i32 = arith.constant 1 : i32
    %c0_i32_11 = arith.constant 0 : i32
    %12 = tpu.memref_slice %arg9[%c1_i32, %c0_i32_11] : memref<8x32xf32, #tpu.memory_space<vmem>> -> memref<1x32xf32, #tpu.memory_space<vmem>>
    %13 = tpu.memref_slice %arg10[%c0_i32_9] : memref<1x!tpu.dma_semaphore, #tpu.memory_space<semaphore_mem>> -> memref<1x!tpu.dma_semaphore, #tpu.memory_space<semaphore_mem>>
    %14 = tpu.memref_squeeze %13 : memref<1x!tpu.dma_semaphore, #tpu.memory_space<semaphore_mem>> -> memref<!tpu.dma_semaphore, #tpu.memory_space<semaphore_mem>>
    tpu.enqueue_dma source(%11 : memref<1x32xf32, #tpu.memory_space<any>>) target(%12 : memref<1x32xf32, #tpu.memory_space<vmem>>) target_semaphore(%14 : memref<!tpu.dma_semaphore, #tpu.memory_space<semaphore_mem>>)
    %c2 = arith.constant 2 : index
    %15 = memref.load %arg1[%c2] : memref<4xi32, #tpu.memory_space<smem>>
    %c0_i32_12 = arith.constant 0 : i32
    %c0_i32_13 = arith.constant 0 : i32
    %16 = tpu.memref_slice %arg2[%15, %c0_i32_13] : memref<19x32xf32, #tpu.memory_space<any>> -> memref<1x32xf32, #tpu.memory_space<any>>
    %c2_i32 = arith.constant 2 : i32
    %c0_i32_14 = arith.constant 0 : i32
    %17 = tpu.memref_slice %arg9[%c2_i32, %c0_i32_14] : memref<8x32xf32, #tpu.memory_space<vmem>> -> memref<1x32xf32, #tpu.memory_space<vmem>>
    %18 = tpu.memref_slice %arg10[%c0_i32_12] : memref<1x!tpu.dma_semaphore, #tpu.memory_space<semaphore_mem>> -> memref<1x!tpu.dma_semaphore, #tpu.memory_space<semaphore_mem>>
    %19 = tpu.memref_squeeze %18 : memref<1x!tpu.dma_semaphore, #tpu.memory_space<semaphore_mem>> -> memref<!tpu.dma_semaphore, #tpu.memory_space<semaphore_mem>>
    tpu.enqueue_dma source(%16 : memref<1x32xf32, #tpu.memory_space<any>>) target(%17 : memref<1x32xf32, #tpu.memory_space<vmem>>) target_semaphore(%19 : memref<!tpu.dma_semaphore, #tpu.memory_space<semaphore_mem>>)
    %c3 = arith.constant 3 : index
    %20 = memref.load %arg1[%c3] : memref<4xi32, #tpu.memory_space<smem>>
    %c0_i32_15 = arith.constant 0 : i32
    %c0_i32_16 = arith.constant 0 : i32
    %21 = tpu.memref_slice %arg2[%20, %c0_i32_16] : memref<19x32xf32, #tpu.memory_space<any>> -> memref<1x32xf32, #tpu.memory_space<any>>
    %c3_i32 = arith.constant 3 : i32
    %c0_i32_17 = arith.constant 0 : i32
    %22 = tpu.memref_slice %arg9[%c3_i32, %c0_i32_17] : memref<8x32xf32, #tpu.memory_space<vmem>> -> memref<1x32xf32, #tpu.memory_space<vmem>>
    %23 = tpu.memref_slice %arg10[%c0_i32_15] : memref<1x!tpu.dma_semaphore, #tpu.memory_space<semaphore_mem>> -> memref<1x!tpu.dma_semaphore, #tpu.memory_space<semaphore_mem>>
    %24 = tpu.memref_squeeze %23 : memref<1x!tpu.dma_semaphore, #tpu.memory_space<semaphore_mem>> -> memref<!tpu.dma_semaphore, #tpu.memory_space<semaphore_mem>>
    tpu.enqueue_dma source(%21 : memref<1x32xf32, #tpu.memory_space<any>>) target(%22 : memref<1x32xf32, #tpu.memory_space<vmem>>) target_semaphore(%24 : memref<!tpu.dma_semaphore, #tpu.memory_space<semaphore_mem>>)
    %c0_18 = arith.constant 0 : index
    %25 = memref.load %arg1[%c0_18] : memref<4xi32, #tpu.memory_space<smem>>
    %c0_i32_19 = arith.constant 0 : i32
    %c0_i32_20 = arith.constant 0 : i32
    %26 = tpu.memref_slice %arg2[%25, %c0_i32_20] : memref<19x32xf32, #tpu.memory_space<any>> -> memref<1x32xf32, #tpu.memory_space<any>>
    %c0_i32_21 = arith.constant 0 : i32
    %c0_i32_22 = arith.constant 0 : i32
    %27 = tpu.memref_slice %arg9[%c0_i32_21, %c0_i32_22] : memref<8x32xf32, #tpu.memory_space<vmem>> -> memref<1x32xf32, #tpu.memory_space<vmem>>
    %28 = tpu.memref_slice %arg10[%c0_i32_19] : memref<1x!tpu.dma_semaphore, #tpu.memory_space<semaphore_mem>> -> memref<1x!tpu.dma_semaphore, #tpu.memory_space<semaphore_mem>>
    %29 = tpu.memref_squeeze %28 : memref<1x!tpu.dma_semaphore, #tpu.memory_space<semaphore_mem>> -> memref<!tpu.dma_semaphore, #tpu.memory_space<semaphore_mem>>
    tpu.wait_dma2 semaphore(%29 : memref<!tpu.dma_semaphore, #tpu.memory_space<semaphore_mem>>) src(%26 : memref<1x32xf32, #tpu.memory_space<any>>) dst(%27 : memref<1x32xf32, #tpu.memory_space<vmem>>)
    %c1_23 = arith.constant 1 : index
    %30 = memref.load %arg1[%c1_23] : memref<4xi32, #tpu.memory_space<smem>>
    %c0_i32_24 = arith.constant 0 : i32
    %c0_i32_25 = arith.constant 0 : i32
    %31 = tpu.memref_slice %arg2[%30, %c0_i32_25] : memref<19x32xf32, #tpu.memory_space<any>> -> memref<1x32xf32, #tpu.memory_space<any>>
    %c1_i32_26 = arith.constant 1 : i32
    %c0_i32_27 = arith.constant 0 : i32
    %32 = tpu.memref_slice %arg9[%c1_i32_26, %c0_i32_27] : memref<8x32xf32, #tpu.memory_space<vmem>> -> memref<1x32xf32, #tpu.memory_space<vmem>>
    %33 = tpu.memref_slice %arg10[%c0_i32_24] : memref<1x!tpu.dma_semaphore, #tpu.memory_space<semaphore_mem>> -> memref<1x!tpu.dma_semaphore, #tpu.memory_space<semaphore_mem>>
    %34 = tpu.memref_squeeze %33 : memref<1x!tpu.dma_semaphore, #tpu.memory_space<semaphore_mem>> -> memref<!tpu.dma_semaphore, #tpu.memory_space<semaphore_mem>>
    tpu.wait_dma2 semaphore(%34 : memref<!tpu.dma_semaphore, #tpu.memory_space<semaphore_mem>>) src(%31 : memref<1x32xf32, #tpu.memory_space<any>>) dst(%32 : memref<1x32xf32, #tpu.memory_space<vmem>>)
    %c2_28 = arith.constant 2 : index
    %35 = memref.load %arg1[%c2_28] : memref<4xi32, #tpu.memory_space<smem>>
    %c0_i32_29 = arith.constant 0 : i32
    %c0_i32_30 = arith.constant 0 : i32
    %36 = tpu.memref_slice %arg2[%35, %c0_i32_30] : memref<19x32xf32, #tpu.memory_space<any>> -> memref<1x32xf32, #tpu.memory_space<any>>
    %c2_i32_31 = arith.constant 2 : i32
    %c0_i32_32 = arith.constant 0 : i32
    %37 = tpu.memref_slice %arg9[%c2_i32_31, %c0_i32_32] : memref<8x32xf32, #tpu.memory_space<vmem>> -> memref<1x32xf32, #tpu.memory_space<vmem>>
    %38 = tpu.memref_slice %arg10[%c0_i32_29] : memref<1x!tpu.dma_semaphore, #tpu.memory_space<semaphore_mem>> -> memref<1x!tpu.dma_semaphore, #tpu.memory_space<semaphore_mem>>
    %39 = tpu.memref_squeeze %38 : memref<1x!tpu.dma_semaphore, #tpu.memory_space<semaphore_mem>> -> memref<!tpu.dma_semaphore, #tpu.memory_space<semaphore_mem>>
    tpu.wait_dma2 semaphore(%39 : memref<!tpu.dma_semaphore, #tpu.memory_space<semaphore_mem>>) src(%36 : memref<1x32xf32, #tpu.memory_space<any>>) dst(%37 : memref<1x32xf32, #tpu.memory_space<vmem>>)
    %c3_33 = arith.constant 3 : index
    %40 = memref.load %arg1[%c3_33] : memref<4xi32, #tpu.memory_space<smem>>
    %c0_i32_34 = arith.constant 0 : i32
    %c0_i32_35 = arith.constant 0 : i32
    %41 = tpu.memref_slice %arg2[%40, %c0_i32_35] : memref<19x32xf32, #tpu.memory_space<any>> -> memref<1x32xf32, #tpu.memory_space<any>>
    %c3_i32_36 = arith.constant 3 : i32
    %c0_i32_37 = arith.constant 0 : i32
    %42 = tpu.memref_slice %arg9[%c3_i32_36, %c0_i32_37] : memref<8x32xf32, #tpu.memory_space<vmem>> -> memref<1x32xf32, #tpu.memory_space<vmem>>
    %43 = tpu.memref_slice %arg10[%c0_i32_34] : memref<1x!tpu.dma_semaphore, #tpu.memory_space<semaphore_mem>> -> memref<1x!tpu.dma_semaphore, #tpu.memory_space<semaphore_mem>>
    %44 = tpu.memref_squeeze %43 : memref<1x!tpu.dma_semaphore, #tpu.memory_space<semaphore_mem>> -> memref<!tpu.dma_semaphore, #tpu.memory_space<semaphore_mem>>
    tpu.wait_dma2 semaphore(%44 : memref<!tpu.dma_semaphore, #tpu.memory_space<semaphore_mem>>) src(%41 : memref<1x32xf32, #tpu.memory_space<any>>) dst(%42 : memref<1x32xf32, #tpu.memory_space<vmem>>)
    %cst = arith.constant 0.000000e+00 : f32
    %45 = vector.broadcast %cst : f32 to vector<4x32xf32>
    %c4 = arith.constant 4 : index
    %c0_38 = arith.constant 0 : index
    %46 = vector.load %arg9[%c4, %c0_38] : memref<8x32xf32, #tpu.memory_space<vmem>>, vector<4x32xf32>
    tpu.vector_store %arg9[%c4, %c0_38], %45 {strides = array<i32>} : memref<8x32xf32, #tpu.memory_space<vmem>>, vector<4x32xf32>,
    %cst_39 = arith.constant 0.000000e+00 : f32
    %47 = vector.broadcast %cst_39 : f32 to vector<8x32xf32>
    %c0_i32_40 = arith.constant 0 : i32
    %c0_i32_41 = arith.constant 0 : i32
    %c0_i32_42 = arith.constant 0 : i32
    %c0_i32_43 = arith.constant 0 : i32
    %48 = tpu.memref_slice %arg3[%c0_i32_42, %c0_i32_43] : memref<32x32xf32, #tpu.memory_space<any>> -> memref<32x32xf32, #tpu.memory_space<any>>
    %c0_i32_44 = arith.constant 0 : i32
    %c0_i32_45 = arith.constant 0 : i32
    %49 = tpu.memref_slice %arg8[%c0_i32_40, %c0_i32_44, %c0_i32_45] : memref<2x32x32xf32, #tpu.memory_space<vmem>> -> memref<1x32x32xf32, #tpu.memory_space<vmem>>
    %50 = tpu.memref_squeeze %49 : memref<1x32x32xf32, #tpu.memory_space<vmem>> -> memref<32x32xf32, #tpu.memory_space<vmem>>
    %51 = tpu.memref_slice %arg11[%c0_i32_41] : memref<2x!tpu.dma_semaphore, #tpu.memory_space<semaphore_mem>> -> memref<1x!tpu.dma_semaphore, #tpu.memory_space<semaphore_mem>>
    %52 = tpu.memref_squeeze %51 : memref<1x!tpu.dma_semaphore, #tpu.memory_space<semaphore_mem>> -> memref<!tpu.dma_semaphore, #tpu.memory_space<semaphore_mem>>
    tpu.wait_dma2 semaphore(%52 : memref<!tpu.dma_semaphore, #tpu.memory_space<semaphore_mem>>) src(%48 : memref<32x32xf32, #tpu.memory_space<any>>) dst(%50 : memref<32x32xf32, #tpu.memory_space<vmem>>)
    %c0_46 = arith.constant 0 : index
    %c0_47 = arith.constant 0 : index
    %53 = vector.load %arg9[%c0_46, %c0_47] : memref<8x32xf32, #tpu.memory_space<vmem>>, vector<8x32xf32>
    %c0_48 = arith.constant 0 : index
    %c0_49 = arith.constant 0 : index
    %c0_50 = arith.constant 0 : index
    %54 = vector.load %arg8[%c0_48, %c0_49, %c0_50] : memref<2x32x32xf32, #tpu.memory_space<vmem>>, vector<1x32x32xf32>
    %55 = vector.shape_cast %54 : vector<1x32x32xf32> to vector<32x32xf32>
    %cst_51 = arith.constant dense<0.000000e+00> : vector<8x32xf32>
    %56 = tpu.matmul %53, %55, %cst_51 {dimension_numbers = #tpu.dot_dimension_numbers<[1], [0], [0], [1], [0, 0, 1, 1], [], []>} : vector<8x32xf32>, vector<32x32xf32>, vector<8x32xf32> -> vector<8x32xf32>
    %57 = arith.addf %47, %56 : vector<8x32xf32>
    %c0_52 = arith.constant 0 : index
    %c0_53 = arith.constant 0 : index
    %58 = vector.load %arg4[%c0_52, %c0_53] : memref<1x32xf32, #tpu.memory_space<vmem>>, vector<1x32xf32>
    %59 = vector.broadcast %58 : vector<1x32xf32> to vector<8x32xf32>
    %60 = arith.addf %57, %59 : vector<8x32xf32>
    %61 = math.tanh %60 : vector<8x32xf32>
    %c0_54 = arith.constant 0 : index
    %c0_55 = arith.constant 0 : index
    %62 = vector.load %arg5[%c0_54, %c0_55] : memref<1x32xf32, #tpu.memory_space<vmem>>, vector<1x32xf32>
    %63 = vector.broadcast %62 : vector<1x32xf32> to vector<8x32xf32>
    %64 = arith.mulf %61, %63 : vector<8x32xf32>
    %cst_56 = arith.constant dense<0.000000e+00> : vector<8xf32>
    %65 = vector.multi_reduction <add>, %64, %cst_56 [1] : vector<8x32xf32> to vector<8xf32>
    %66 = vector.shape_cast %65 : vector<8xf32> to vector<8x1xf32>
    %c0_57 = arith.constant 0 : index
    %c0_58 = arith.constant 0 : index
    %67 = vector.load %arg6[%c0_57, %c0_58] : memref<1x1xf32, #tpu.memory_space<vmem>>, vector<1x1xf32>
    %68 = vector.broadcast %67 : vector<1x1xf32> to vector<8x1xf32>
    %69 = arith.addf %66, %68 : vector<8x1xf32>
    %70 = arith.negf %69 : vector<8x1xf32>
    %71 = math.exp %70 : vector<8x1xf32>
    %cst_59 = arith.constant 1.000000e+00 : f32
    %72 = vector.broadcast %cst_59 : f32 to vector<8x1xf32>
    %73 = arith.addf %72, %71 : vector<8x1xf32>
    %74 = arith.divf %72, %73 : vector<8x1xf32>
    %75 = vector.extract_strided_slice %74 {offsets = [0, 0], sizes = [4, 1], strides = [1, 1]} : vector<8x1xf32> to vector<4x1xf32>
    %c0_60 = arith.constant 0 : index
    %c0_61 = arith.constant 0 : index
    %76 = vector.load %arg7[%c0_60, %c0_61] : memref<4x1xf32, #tpu.memory_space<vmem>>, vector<4x1xf32>
    tpu.vector_store %arg7[%c0_60, %c0_61], %75 {strides = array<i32>} : memref<4x1xf32, #tpu.memory_space<vmem>>, vector<4x1xf32>,
    return
  }
  func.func @transform_2(%arg0: i32, %arg1: memref<4xi32, #tpu.memory_space<smem>>) -> (i32, i32) {
    %c0_i32 = arith.constant 0 : i32
    %c0_i32_0 = arith.constant 0 : i32
    %c0_i32_1 = arith.constant 0 : i32
    return %c0_i32, %c0_i32_0 : i32, i32
  }
  func.func @transform_3(%arg0: i32, %arg1: memref<4xi32, #tpu.memory_space<smem>>) -> (i32, i32) {
    %c0_i32 = arith.constant 0 : i32
    %c0_i32_0 = arith.constant 0 : i32
    %c0_i32_1 = arith.constant 0 : i32
    return %c0_i32, %c0_i32_0 : i32, i32
  }
  func.func @transform_4(%arg0: i32, %arg1: memref<4xi32, #tpu.memory_space<smem>>) -> (i32, i32) {
    %c0_i32 = arith.constant 0 : i32
    %c0_i32_0 = arith.constant 0 : i32
    %c0_i32_1 = arith.constant 0 : i32
    return %c0_i32, %c0_i32_0 : i32, i32
  }
  func.func @transform_5(%arg0: i32, %arg1: memref<4xi32, #tpu.memory_space<smem>>) -> (i32, i32) {
    %c0_i32 = arith.constant 0 : i32
    %c0_i32_0 = arith.constant 0 : i32
    %c0_i32_1 = arith.constant 0 : i32
    return %c0_i32, %c0_i32_0 : i32, i32
  }
}

</mosaic_0001>

<bundles_post_ra>
// kernel: tpu_custom_call.1
= control target key start
LH: loop header
LB: loop body
LE: loop exit
PB: predicated region body
PF: predicated region fallthrough
CT: control target
= control target key end

     0   :  { %s558_s0 = inlined_call_operand.vmem [shape: s32[4], index: 0, kind: input, shape index: {}]   ;;  %s559_s1 = inlined_call_operand.hbm [shape: f32[19,32], index: 1, kind: input, shape index: {}]   ;;  %s560_s2 = inlined_call_operand.hbm [shape: f32[32,32], index: 2, kind: input, shape index: {}]   ;;  %s561_s3 = inlined_call_operand.vmem [shape: f32[1,32], index: 3, kind: input, shape index: {}]   ;;  %s562_s4 = inlined_call_operand.vmem [shape: f32[1,32], index: 4, kind: input, shape index: {}]   ;;  %s563_s6 = inlined_call_operand.vmem [shape: f32[4,1], index: 6, kind: output, shape index: {}]   ;;  %s564_s5 = inlined_call_operand.<no memory space> [shape: f32[1,1], index: 5, kind: input, shape index: {}]  }
   0x1   :  { %s11_s23 = sshll.u32 %s558_s0, 4  ;;  %v15_v0 = vstv %s564_s5  ;;  %s12_s23 = int_to_ptr.vmem [resolvable:$true] %s11_s23 }
   0x2   :  { %16 = vst [vmem:[#allocation8] sm:$0x1] %v15_v0  ;;  %s303_s26 = scalar_lea.vmem %s12_s23, 16  ;;  %p308_p1 = scmp.lt.s32.totalorder %s12_s23, %s12_s23 }
   0x3   :  { %p304_p0 = scmp.ne.s32.totalorder %s12_s23, %s303_s26  ;;  %p309_p2 = scmp.lt.s32.totalorder %s303_s26, %s303_s26 }
   0x5   :  { %p310_p3 = por %p309_p2, %p308_p1 }
   0x7   :  { %p311_p4 = pnand %p310_p3, %p304_p0 }
   0x9   :  { %314 = shalt.err (!%p311_p4)  }
   0xa   :  { %s429_s27 = smov [#allocation7]  }
   0xb   :  { %14 = dma.vmem_to_smem %s12_s23, 16, %s429_s27, [#allocation6] }
   0xc   :  { %423 = dma.done.wait [#allocation6], 16 }
   0xd   :  { %424 = vsyncadd [#allocation6], 4294967280 }
   0xe   :  { %18 = sfence }
   0xf   :  { %s36_s28 = sld [smem:[#allocation7]]  ;;  %s430_s0 = smov [#allocation3]  }
  0x10   :  { %s46_s29 = sshll.u32 %s430_s0, 4  ;;  %s478_s30 = sld [smem:[#allocation7 + $0x1]]  ;;  %s480_s29 = int_to_ptr.vmem [resolvable:$true] %s46_s29 }
  0x11   :  { %s431_s5 = smov [#allocation3 + $0x1]   ;;  %s482_s8 = sld [smem:[#allocation7 + $0x2]] }
  0x12   :  { %s61_s7 = sshll.u32 %s431_s5, 4  ;;  %s432_s9 = smov [#allocation3 + $0x2]   ;;  %s484_s7 = int_to_ptr.vmem [resolvable:$true] %s61_s7 }
  0x13   :  { %s76_s10 = sshll.u32 %s432_s9, 4  ;;  %s495_s19 = scalar_lea.hbm %s559_s1, 384  ;;  %s486_s10 = int_to_ptr.vmem [resolvable:$true] %s76_s10 }
  0x15   :  { %s258_s11 = sshll.u32 %s36_s28, 4 }
  0x16   :  { %s38_s14 = scalar_lea.hbm %s559_s1, %s258_s11  ;;  %s260_s15 = sshll.u32 %s478_s30, 4 }
  0x17   :  { %s315_s16 = scalar_lea.hbm %s38_s14, 16  ;;  %p318_p6 = scmp.lt.s32.totalorder %s38_s14, %s559_s1 }
  0x18   :  { %p316_p5 = scmp.ne.s32.totalorder %s38_s14, %s315_s16  ;;  %p319_p7 = scmp.lt.s32.totalorder %s495_s19, %s315_s16 }
  0x1a   :  { %p320_p8 = por %p319_p7, %p318_p6 }
  0x1c   :  { %p321_p9 = pnand %p320_p8, %p316_p5 }
  0x1e   :  { %324 = shalt.err (!%p321_p9)  }
  0x1f   :  { %s325_s22 = scalar_lea.vmem %s480_s29, 16  ;;  %s504_s23 = scalar_lea.vmem %s480_s29, 128 }
  0x20   :  { %p326_p10 = scmp.ne.s32.totalorder %s480_s29, %s325_s22  ;;  %p330_p11 = scmp.lt.s32.totalorder %s480_s29, %s480_s29 }
  0x21   :  { %p331_p12 = scmp.lt.s32.totalorder %s504_s23, %s325_s22 }
  0x23   :  { %p332_p13 = por %p331_p12, %p330_p11 }
  0x25   :  { %p333_p0 = pnand %p332_p13, %p326_p10 }
  0x27   :  { %336 = shalt.err (!%p333_p0)  }
  0x28   :  { %49 = dma.hbm_to_vmem [thread:$0]  %s38_s14, 16, %s480_s29, [#allocation4] }
  0x29   :  { %s52_s26 = scalar_lea.hbm %s559_s1, %s260_s15  ;;  %s262_s27 = sshll.u32 %s482_s8, 4 }
  0x2a   :  { %s337_s28 = scalar_lea.hbm %s52_s26, 16  ;;  %p340_p2 = scmp.lt.s32.totalorder %s52_s26, %s559_s1 }
  0x2b   :  { %p338_p1 = scmp.ne.s32.totalorder %s52_s26, %s337_s28  ;;  %p341_p3 = scmp.lt.s32.totalorder %s495_s19, %s337_s28 }
  0x2d   :  { %p342_p4 = por %p341_p3, %p340_p2 }
  0x2f   :  { %p343_p5 = pnand %p342_p4, %p338_p1 }
  0x31   :  { %346 = shalt.err (!%p343_p5)  }
  0x32   :  { %s347_s5 = scalar_lea.vmem %s484_s7, 16  ;;  %p352_p7 = scmp.lt.s32.totalorder %s484_s7, %s480_s29 }
  0x33   :  { %p348_p6 = scmp.ne.s32.totalorder %s484_s7, %s347_s5  ;;  %p353_p8 = scmp.lt.s32.totalorder %s504_s23, %s347_s5 }
  0x35   :  { %p354_p9 = por %p353_p8, %p352_p7 }
  0x37   :  { %p355_p10 = pnand %p354_p9, %p348_p6 }
  0x39   :  { %358 = shalt.err (!%p355_p10)  }
  0x3a   :  { %64 = dma.hbm_to_vmem [thread:$0]  %s52_s26, 16, %s484_s7, [#allocation4] }
  0x3b   :  { %s67_s11 = scalar_lea.hbm %s559_s1, %s262_s27  ;;  %s433_s12 = smov [#allocation2]  }
  0x3c   :  { %s32_s13 = sshll.u32 %s433_s12, 4  ;;  %s359_s14 = scalar_lea.hbm %s67_s11, 16  ;;  %s33_s13 = int_to_ptr.vmem [resolvable:$true] %s32_s13 }
  0x3d   :  { %p360_p11 = scmp.ne.s32.totalorder %s67_s11, %s359_s14  ;;  %p362_p12 = scmp.lt.s32.totalorder %s67_s11, %s559_s1 }
  0x3e   :  { %p363_p13 = scmp.lt.s32.totalorder %s495_s19, %s359_s14 }
  0x40   :  { %p364_p0 = por %p363_p13, %p362_p12 }
  0x42   :  { %p365_p1 = pnand %p364_p0, %p360_p11 }
  0x44   :  { %368 = shalt.err (!%p365_p1)  }
  0x45   :  { %s369_s7 = scalar_lea.vmem %s486_s10, 16  ;;  %p374_p3 = scmp.lt.s32.totalorder %s486_s10, %s480_s29 }
  0x46   :  { %p370_p2 = scmp.ne.s32.totalorder %s486_s10, %s369_s7  ;;  %p375_p4 = scmp.lt.s32.totalorder %s504_s23, %s369_s7 }
  0x48   :  { %p376_p5 = por %p375_p4, %p374_p3 }
  0x4a   :  { %p377_p6 = pnand %p376_p5, %p370_p2 }
  0x4c   :  { %380 = shalt.err (!%p377_p6)  }
  0x4d   :  { %79 = dma.hbm_to_vmem [thread:$0]  %s67_s11, 16, %s486_s10, [#allocation4] }
  0x4e   :  { %s263_s17 = sld [smem:[#allocation7 + $0x3]]  ;;  %s389_s18 = scalar_lea.vmem %s33_s13, 512 }
  0x4f   :  { %p390_p7 = scmp.ne.s32.totalorder %s33_s13, %s389_s18  ;;  %s393_s20 = scalar_lea.vmem %s33_s13, 1024 }
  0x50   :  { %p394_p8 = scmp.lt.s32.totalorder %s33_s13, %s33_s13  ;;  %p395_p9 = scmp.lt.s32.totalorder %s393_s20, %s389_s18 }
  0x52   :  { %p396_p10 = por %p395_p9, %p394_p8 }
  0x54   :  { %p397_p11 = pnand %p396_p10, %p390_p7 }
  0x56   :  { %400 = shalt.err (!%p397_p11)  }
  0x57   :  { %35 = dma.hbm_to_vmem [thread:$0]  %s560_s2, 512, %s33_s13, [#allocation5] }
  0x58   :  { %s434_s24 = smov [#allocation3 + $0x3]   ;;  %s264_s26 = sshll.u32 %s263_s17, 4 }
  0x59   :  { %s91_s25 = sshll.u32 %s434_s24, 4  ;;  %s82_s28 = scalar_lea.hbm %s559_s1, %s264_s26  ;;  %s92_s25 = int_to_ptr.vmem [resolvable:$true] %s91_s25 }
  0x5a   :  { %s401_s0 = scalar_lea.hbm %s82_s28, 16  ;;  %p404_p13 = scmp.lt.s32.totalorder %s82_s28, %s559_s1 }
  0x5b   :  { %p402_p12 = scmp.ne.s32.totalorder %s82_s28, %s401_s0  ;;  %p405_p0 = scmp.lt.s32.totalorder %s495_s19, %s401_s0 }
  0x5d   :  { %p406_p1 = por %p405_p0, %p404_p13 }
  0x5f   :  { %p407_p2 = pnand %p406_p1, %p402_p12 }
  0x61   :  { %410 = shalt.err (!%p407_p2)  }
  0x62   :  { %s411_s8 = scalar_lea.vmem %s92_s25, 16  ;;  %p416_p4 = scmp.lt.s32.totalorder %s92_s25, %s480_s29 }
  0x63   :  { %p412_p3 = scmp.ne.s32.totalorder %s92_s25, %s411_s8  ;;  %p417_p5 = scmp.lt.s32.totalorder %s504_s23, %s411_s8 }
  0x65   :  { %p418_p6 = por %p417_p5, %p416_p4 }
  0x67   :  { %p419_p7 = pnand %p418_p6, %p412_p3 }
  0x69   :  { %422 = shalt.err (!%p419_p7)  }
  0x6a   :  { %94 = dma.hbm_to_vmem [thread:$0]  %s82_s28, 16, %s92_s25, [#allocation4] }
  0x6b   :  { %425 = dma.done.wait [#allocation4], 64 }
  0x6c   :  { %426 = vsyncadd [#allocation4], 4294967232  ;;  %vm108_vm0 = vcmask 257024   ;;  %v435_v1 = vmov 0.0  }
  0x6d   :  { %109 = vst.msk [vmem:[#allocation3 + $0x4] sm:$0xf] %vm108_vm0, %v435_v1 }
  0x6e   :  { %427 = dma.done.wait [#allocation5], 512 }
  0x6f   :  { %428 = vsyncadd [#allocation5], 4294966784  ;;  %278 = vmatprep.subr.mxu0 %v435_v1  ;;  %vm436_vm1 = vmmov 0   ;;  %v117_v2 = vld [vmem:[#allocation2 + $0x18] sm:$0xff]  ;;  %v116_v3 = vld [vmem:[#allocation2 + $0x10] sm:$0xff]  ;;  %vm125_vm2 = vcmask 261120  }
  0x70   :  { %286 = vmatprep.mubr.msk.f32.mxu0 %vm436_vm1, %v435_v1  ;;  %279 = vmatpush3.msra.mxu0 %v117_v2  ;;  %v115_v4 = vld [vmem:[#allocation2 + $0x8] sm:$0xff]  ;;  %v114_v5 = vld [vmem:[#allocation2] sm:$0xff]  ;;  %vm225_vm3 = vcmask 3072  }
  0x71   :  { %280 = vmatprep.subr.mxu0 %v435_v1  ;;  %v265_v7 = vld [vmem:[%s561_s3] ss:$0 sm:$0xff]  ;;  %v268_v15 = vld [vmem:[#allocation8] ss:$0 sm:$0xff] }
  0x72   :  { %281 = vmatpush3.msra.mxu0 %v116_v3  ;;  %v267_v11 = vld [vmem:[%s562_s4] ss:$0 sm:$0xff] }
  0x73   :  { %282 = vmatprep.subr.mxu0 %v435_v1 }
  0x74   :  { %283 = vmatpush3.msra.mxu0 %v115_v4  ;;  %v113_v6 = vld [vmem:[#allocation3] sm:$0xff] }
  0x75   :  { %284 = vmatprep.subr.mxu0 %v435_v1 }
  0x76   :  { %285 = vmatpush3.msra.mxu0 %v114_v5 }
  0x77   :  { %287 = vmatmul.mubr.msk.f32.vlgmr.msra.gmra.mxu0 %vm125_vm2, %v113_v6 }
 0x137   :  { %v195_v8 = vpop.f32.mrf.mxu0 }
 0x138   :  { %v196_v9 = vadd.f32 %v265_v7, %v195_v8 }
 0x139   :  { %v288_v10 = vpop.f32.mrf.mxu0 }
 0x13a   :  { %297 = vtanh.f32 %v196_v9 }
 0x147   :  { %v298_v12 = vpop.eup %297 }
 0x148   :  { %v207_v13 = vmul.f32 %v298_v12, %v267_v11 }
 0x14a   :  { %v208_v14 = vsel %vm125_vm2, %v207_v13, 0.0 }
 0x14b   :  { %209 = vadd.xlane.f32.xlu0 %v208_v14 }
 0x1d4   :  { %v210_v16 = vpop.xlane.xlu0 %209 }
 0x1d5   :  { %v218_v17 = vadd.f32 %v268_v15, %v210_v16 }
 0x1d7   :  { %v269_v18 = vmul.f32 -1.442695, %v218_v17 }
 0x1d9   :  { %299 = vpow2.f32 %v269_v18 }
 0x1e6   :  { %v300_v19 = vpop.eup %299 }
 0x1e7   :  { %v222_v20 = vadd.f32 1.0, %v300_v19 }
 0x1e9   :  { %301 = vrcp.f32 %v222_v20 }
 0x1f6   :  { %v302_v21 = vpop.eup %301 }
 0x1f7   :  { %226 = vst.msk [vmem:[%s563_s6] sm:$0xf] %vm225_vm3, %v302_v21 }
 0x1f8   :  { %231 = vsyncmov [#allocation4] }
 0x1fb   :  { %s232_s4 = vpop.sfrf %231 }
 0x1fc   :  { %p270_p8 = scmp.ne.s32.totalorder %s232_s4, 0 }
 0x1fe   :  { %236 = shalt.err (%p270_p8)  }
 0x1ff   :  { %237 = vsyncmov [#allocation5] }
 0x202   :  { %s238_s9 = vpop.sfrf %237 }
 0x203   :  { %p271_p9 = scmp.ne.s32.totalorder %s238_s9, 0 }
 0x205   :  { %242 = shalt.err (%p271_p9)  }
 0x206   :  { %244 = vsyncmov [#allocation5 + $0x1] }
 0x209   :  { %s245_s11 = vpop.sfrf %244 }
 0x20a   :  { %p272_p10 = scmp.ne.s32.totalorder %s245_s11, 0 }
 0x20c   :  { %249 = shalt.err (%p272_p10)  }

</bundles_post_ra>
